<compile_context>
chip_gen: v7x
topology: tpu7x:2x2x1
jax: 0.10.0
libtpu: 0.0.40
codegen_flags: <defaults>
</compile_context>

<pallas_src>
import math

import jax
import jax.numpy as jnp
from jax import lax
from jax.experimental import pallas as pl
from jax.experimental.pallas import tpu as pltpu

_INV_SQRT2 = 1.0 / math.sqrt(2.0)


def _gelu_exact(x):
    # torch.nn.GELU() / F.gelu default = exact erf form; computed in f32.
    return 0.5 * x * (1.0 + lax.erf(x * _INV_SQRT2))


def _gelu_tanh(x):
    # tanh approximation: lowers to the EUP (separate VLIW slot from the VALU).
    return jax.nn.gelu(x, approximate=True)


# --------------------------------------------------------------------------
# Kernel factory
# --------------------------------------------------------------------------
def _make_kernel(glu, use_scratch, gelu_fn, compute_dtype):
    """Builds the fused FFN / GEGLU kernel body."""

    def kernel(*refs):
        if glu:
            if use_scratch:
                (x_ref, w1a_ref, b1a_ref, w1g_ref, b1g_ref,
                 w2_ref, b2_ref, o_ref, acc_ref) = refs
            else:
                (x_ref, w1a_ref, b1a_ref, w1g_ref, b1g_ref,
                 w2_ref, b2_ref, o_ref) = refs
                acc_ref = o_ref                     # f32 output = accumulator
        else:
            if use_scratch:
                (x_ref, w1a_ref, b1a_ref, w2_ref, b2_ref, o_ref, acc_ref) = refs
            else:
                (x_ref, w1a_ref, b1a_ref, w2_ref, b2_ref, o_ref) = refs
                acc_ref = o_ref

        k = pl.program_id(1)

        @pl.when(k == 0)
        def _():
            acc_ref[...] = jnp.zeros_like(acc_ref)

        x = x_ref[...]
        if glu:
            # GEGLU: proj(x).chunk(2, -1) -> value half (cols [:inner]) * GELU(gate half).
            a = jnp.dot(x, w1a_ref[...], preferred_element_type=jnp.float32)
            g = jnp.dot(x, w1g_ref[...], preferred_element_type=jnp.float32)
            h = (a + b1a_ref[...].astype(jnp.float32)) * gelu_fn(
                g + b1g_ref[...].astype(jnp.float32))
        else:
            h = jnp.dot(x, w1a_ref[...], preferred_element_type=jnp.float32)
            h = gelu_fn(h + b1a_ref[...].astype(jnp.float32))

        # Partial second matmul accumulated into the resident output/acc tile.
        acc_ref[...] += jnp.dot(
            h.astype(compute_dtype), w2_ref[...],
            preferred_element_type=jnp.float32).astype(acc_ref.dtype)

        @pl.when(k == pl.num_programs(1) - 1)
        def _():
            if use_scratch:
                o_ref[...] = (acc_ref[...]
                              + b2_ref[...].astype(jnp.float32)).astype(o_ref.dtype)
            else:
                o_ref[...] += b2_ref[...].astype(o_ref.dtype)

    return kernel


# --------------------------------------------------------------------------
# Tile selection / VMEM budgeting
# --------------------------------------------------------------------------
def _vmem_capacity_bytes():
    try:
        info = pltpu.get_tpu_info()
        cap = getattr(info, "vmem_capacity_bytes", None)
        if cap:
            return int(cap)
    except Exception:
        pass
    return 64 * 1024 * 1024   # conservative: v7x per-TensorCore VMEM


def _round_down_to(value, q):
    return max(q, value - value % q)


def _pick_row_tile(m, block_m):
    """Row tile: multiple of 8 (sublane), prefer 256-multiples for big M, and
    guarantee >= 2 row tiles whenever M allows (megacore sharding on v7x)."""
    q = 256 if m >= 512 else 8
    target = min(block_m, max(q, pl.cdiv(m, 2)))
    return _round_down_to(min(target, max(q, m)), q)


def _pick_divisor(total, target):
    """Largest 256- (then 128-) aligned divisor of `total` that is <= target,
    else the full extent (always a legal block)."""
    if total <= target:
        return total
    for q in (256, 128):
        t = min(target, total)
        t -= t % q
        while t >= q:
            if total % t == 0:
                return t
            t -= q
    return total


def _vmem_footprint(tm, tk, dim, dim_out, glu, cbytes, obytes, use_scratch):
    n1 = 2 if glu else 1
    f = 2 * tm * dim * cbytes                 # x (double-buffered)
    f += 2 * n1 * dim * tk * cbytes           # W1 (+ gate) streams
    f += 2 * n1 * 8 * max(tk, 128) * 4        # b1 (+ gate), (8,128)-padded, f32
    f += 2 * tk * dim_out * cbytes            # W2 stream
    f += 2 * 8 * max(dim_out, 128) * 4        # b2
    f += 2 * tm * dim_out * obytes            # output blocks
    if use_scratch:
        f += tm * dim_out * 4                 # resident f32 accumulator
    f += (3 if glu else 1) * tm * tk * 4      # f32 hidden intermediates
    return f


# --------------------------------------------------------------------------
# Public wrapper
# --------------------------------------------------------------------------
def feed_forward(x, w1, b1, w2, b2, *, glu=False, compute_dtype=None,
                 block_m=512, block_k=512, approximate_gelu=False):
    """Pallas fused FeedForward.

    x : [..., dim]
    w1: [dim, inner]     (glu=False)  or [dim, 2*inner] (glu=True; concatenated
                                         [value | gate] halves, torch .chunk(2,-1))
    b1: [inner]          (glu=False)  or [2*inner]      (glu=True)
    w2: [inner, dim_out],  b2: [dim_out]
    """
    out_dtype = x.dtype
    lead = x.shape[:-1]
    dim = x.shape[-1]
    m = math.prod(lead) if lead else 1

    inner, dim_out = w2.shape
    if glu:
        assert w1.shape == (dim, 2 * inner) and b1.shape == (2 * inner,)
    else:
        assert w1.shape == (dim, inner) and b1.shape == (inner,)

    if compute_dtype is None:
        compute_dtype = jnp.bfloat16 if x.dtype == jnp.bfloat16 else jnp.float32
    compute_dtype = jnp.dtype(compute_dtype)
    cbytes = compute_dtype.itemsize
    obytes = jnp.dtype(out_dtype).itemsize

    x2 = x.reshape(m, dim).astype(compute_dtype)
    w1c = w1.astype(compute_dtype)
    w2c = w2.astype(compute_dtype)
    b1_2d = b1.reshape(1, -1).astype(jnp.float32)     # biases stay f32 (tiny)
    b2_2d = b2.reshape(1, dim_out).astype(jnp.float32)

    use_scratch = out_dtype != jnp.float32

    # ---- tile selection --------------------------------------------------
    weight_bytes = (w1c.size + w2c.size) * cbytes
    # Small weights: single k step; constant index_maps keep W1/W2 resident
    # in VMEM across all row tiles (no re-streaming, no per-step overhead).
    if weight_bytes <= 8 * 1024 * 1024:
        tk = inner
    else:
        tk = _pick_divisor(inner, block_k)
    tm = _pick_row_tile(m, block_m)

    vmem_cap = _vmem_capacity_bytes()
    budget = int(vmem_cap * 0.6)
    q_m = 256 if m >= 512 else 8
    while _vmem_footprint(tm, tk, dim, dim_out, glu, cbytes, obytes,
                          use_scratch) > budget:
        if tm > q_m:
            tm = _round_down_to(tm // 2, q_m)
            continue
        new_tk = _pick_divisor(inner, max(128, tk // 2))
        if new_tk >= tk:
            break
        tk = new_tk

    num_k = inner // tk
    m_pad = pl.cdiv(m, tm) * tm
    if m_pad != m:
        x2 = jnp.pad(x2, ((0, m_pad - m), (0, 0)))
    grid = (m_pad // tm, num_k)

    # ---- specs -------------------------------------------------------------
    x_spec = pl.BlockSpec((tm, dim), lambda i, k: (i, 0))
    w1a_spec = pl.BlockSpec((dim, tk), lambda i, k: (0, k))
    b1a_spec = pl.BlockSpec((1, tk), lambda i, k: (0, k))
    w2_spec = pl.BlockSpec((tk, dim_out), lambda i, k: (k, 0))
    b2_spec = pl.BlockSpec((1, dim_out), lambda i, k: (0, 0))
    o_spec = pl.BlockSpec((tm, dim_out), lambda i, k: (i, 0))

    gelu_fn = _gelu_tanh if approximate_gelu else _gelu_exact

    if glu:
        # Gate half lives at block offset num_k (columns [inner:]); no host-side
        # slicing / HBM copy of the parameters.
        w1g_spec = pl.BlockSpec((dim, tk), lambda i, k: (0, k + num_k))
        b1g_spec = pl.BlockSpec((1, tk), lambda i, k: (0, k + num_k))
        in_specs = [x_spec, w1a_spec, b1a_spec, w1g_spec, b1g_spec, w2_spec, b2_spec]
        args = (x2, w1c, b1_2d, w1c, b1_2d, w2c, b2_2d)
    else:
        in_specs = [x_spec, w1a_spec, b1a_spec, w2_spec, b2_spec]
        args = (x2, w1c, b1_2d, w2c, b2_2d)

    kernel = _make_kernel(glu, use_scratch, gelu_fn, compute_dtype)
    scratch_shapes = ([pltpu.VMEM((tm, dim_out), jnp.float32)]
                      if use_scratch else [])

    footprint = _vmem_footprint(tm, tk, dim, dim_out, glu, cbytes, obytes,
                                use_scratch)
    vmem_limit = min(vmem_cap,
                     max(32 * 1024 * 1024, int(footprint * 1.3) + (4 << 20)))

    inner_total = 2 * inner if glu else inner
    cost = pl.CostEstimate(
        flops=2 * m * dim * inner_total + 2 * m * inner * dim_out,
        transcendentals=m * inner,
        bytes_accessed=int(x2.size * cbytes + w1c.size * cbytes
                           + b1_2d.size * 4 + w2c.size * cbytes
                           + b2_2d.size * 4 + m_pad * dim_out * obytes),
    )

    out = pl.pallas_call(
        kernel,
        out_shape=jax.ShapeDtypeStruct((m_pad, dim_out), out_dtype),
        grid_spec=pltpu.PrefetchScalarGridSpec(
            num_scalar_prefetch=0,
            grid=grid,
            in_specs=in_specs,
            out_specs=o_spec,
            scratch_shapes=scratch_shapes,
        ),
        compiler_params=pltpu.CompilerParams(
            dimension_semantics=("parallel", "arbitrary"),
            vmem_limit_bytes=int(vmem_limit),
        ),
        cost_estimate=cost,
    )(*args)

    if m_pad != m:
        out = out[:m]
    return out.reshape(*lead, dim_out)


def feed_forward_ref(x, w1, b1, w2, b2, *, glu=False):
    """Pure-JAX reference mirroring the PyTorch FeedForward.forward (dropout=0)."""
    h = x @ w1 + b1
    if glu:
        inner = w2.shape[0]
        a, g = h[..., :inner], h[..., inner:]
        h = a * _gelu_exact(g)
    else:
        h = _gelu_exact(h)
    return h @ w2 + b2


if __name__ == "__main__":
    # FeedForward(dim=128, mult=4): inner_dim = 512, dim_out = 128.
    batch, seq, dim, mult = 2, 16, 128, 4
    inner = dim * mult
    dim_out = dim

    key = jax.random.PRNGKey(0)
    k0, k1, k2, k3, k4, k5 = jax.random.split(key, 6)

    x = jax.random.normal(k0, (batch, seq, dim), dtype=jnp.float32)
    w1 = jax.random.normal(k1, (dim, inner), jnp.float32) * (1.0 / math.sqrt(dim))
    b1 = jax.random.normal(k2, (inner,), jnp.float32) * 0.01
    w2 = jax.random.normal(k3, (inner, dim_out), jnp.float32) * (1.0 / math.sqrt(inner))
    b2 = jax.random.normal(k4, (dim_out,), jnp.float32) * 0.01

    # 1) Default path (glu=False), f32 compute, exact-erf GELU (== torch.nn.GELU()).
    y = jax.block_until_ready(feed_forward(x, w1, b1, w2, b2, glu=False))
    y_ref = feed_forward_ref(x, w1, b1, w2, b2, glu=False)
    assert y.shape == (batch, seq, dim_out), y.shape
    assert jnp.allclose(y, y_ref, atol=1e-4, rtol=1e-4), "FFN mismatch vs reference"

    # 2) GEGLU path (glu=True): concatenated [value | gate] halves.
    w1g = jax.random.normal(k5, (dim, 2 * inner), jnp.float32) * (1.0 / math.sqrt(dim))
    b1g = jax.random.normal(k2, (2 * inner,), jnp.float32) * 0.01
    yg = jax.block_until_ready(feed_forward(x, w1g, b1g, w2, b2, glu=True))
    yg_ref = feed_forward_ref(x, w1g, b1g, w2, b2, glu=True)
    assert jnp.allclose(yg, yg_ref, atol=1e-4, rtol=1e-4), "GEGLU mismatch vs reference"

    # 3) Ragged M (padding path): leading shape that is not a tile multiple.
    x_odd = jax.random.normal(k5, (3, 5, dim), dtype=jnp.float32)
    yo = jax.block_until_ready(feed_forward(x_odd, w1, b1, w2, b2, glu=False))
    yo_ref = feed_forward_ref(x_odd, w1, b1, w2, b2, glu=False)
    assert yo.shape == (3, 5, dim_out), yo.shape
    assert jnp.allclose(yo, yo_ref, atol=1e-4, rtol=1e-4), "padded-M mismatch"

    # 4) bf16 MXU-feeding path (halved HBM/VMEM); looser tolerance vs f32 ref.
    yb = jax.block_until_ready(
        feed_forward(x, w1, b1, w2, b2, glu=False, compute_dtype=jnp.bfloat16))
    assert yb.dtype == x.dtype
    assert jnp.allclose(yb, y_ref, atol=1e-1, rtol=1e-1), "bf16 path diverged"

    print("KERNEL_OK")
</pallas_src>

<mosaic_0001>
module attributes {stable_mosaic.version = 11 : i64} {
  func.func @kernel(%arg0: i32, %arg1: i32, %arg2: memref<16x128xf32, #tpu.memory_space<vmem>>, %arg3: memref<128x512xf32, #tpu.memory_space<vmem>>, %arg4: memref<1x512xf32, #tpu.memory_space<vmem>>, %arg5: memref<512x128xf32, #tpu.memory_space<vmem>>, %arg6: memref<1x128xf32, #tpu.memory_space<vmem>>, %arg7: memref<16x128xf32, #tpu.memory_space<vmem>>) attributes {dimension_semantics = [#tpu.dimension_semantics<parallel>, #tpu.dimension_semantics<arbitrary>], iteration_bounds = array<i64: 2, 1>, scalar_prefetch = 0 : i64, scratch_operands = 0 : i64, tpu.core_type = #tpu.core_type<tc>, window_params = [{transform_indices = @transform_0, window_bounds = array<i64: 16, 128>}, {transform_indices = @transform_1, window_bounds = array<i64: 128, 512>}, {transform_indices = @transform_2, window_bounds = array<i64: 1, 512>}, {transform_indices = @transform_3, window_bounds = array<i64: 512, 128>}, {pipeline_mode = #tpu.pipeline_mode<synchronous>, transform_indices = @transform_4, window_bounds = array<i64: 1, 128>}, {transform_indices = @transform_5, window_bounds = array<i64: 16, 128>}]} {
    %c0_i32 = arith.constant 0 : i32
    %0 = arith.cmpi eq, %arg1, %c0_i32 : i32
    %1 = arith.extui %0 : i1 to i32
    %c0_i32_0 = arith.constant 0 : i32
    %2 = arith.cmpi ne, %1, %c0_i32_0 : i32
    scf.if %2 {
      %cst_18 = arith.constant 0.000000e+00 : f32
      %25 = vector.broadcast %cst_18 : f32 to vector<16x128xf32>
      %c0_19 = arith.constant 0 : index
      %c0_20 = arith.constant 0 : index
      %26 = vector.load %arg7[%c0_19, %c0_20] : memref<16x128xf32, #tpu.memory_space<vmem>>, vector<16x128xf32>
      tpu.vector_store %arg7[%c0_19, %c0_20], %25 {strides = array<i32>} : memref<16x128xf32, #tpu.memory_space<vmem>>, vector<16x128xf32>,
    } else {
    }
    %c0 = arith.constant 0 : index
    %c0_1 = arith.constant 0 : index
    %3 = vector.load %arg2[%c0, %c0_1] : memref<16x128xf32, #tpu.memory_space<vmem>>, vector<16x128xf32>
    %c0_2 = arith.constant 0 : index
    %c0_3 = arith.constant 0 : index
    %4 = vector.load %arg3[%c0_2, %c0_3] : memref<128x512xf32, #tpu.memory_space<vmem>>, vector<128x512xf32>
    %cst = arith.constant dense<0.000000e+00> : vector<16x512xf32>
    %5 = tpu.matmul %3, %4, %cst {dimension_numbers = #tpu.dot_dimension_numbers<[1], [0], [0], [1], [0, 0, 1, 1], [], []>} : vector<16x128xf32>, vector<128x512xf32>, vector<16x512xf32> -> vector<16x512xf32>
    %c0_4 = arith.constant 0 : index
    %c0_5 = arith.constant 0 : index
    %6 = vector.load %arg4[%c0_4, %c0_5] : memref<1x512xf32, #tpu.memory_space<vmem>>, vector<1x512xf32>
    %7 = vector.broadcast %6 : vector<1x512xf32> to vector<16x512xf32>
    %8 = arith.addf %5, %7 : vector<16x512xf32>
    %cst_6 = arith.constant 5.000000e-01 : f32
    %9 = vector.broadcast %cst_6 : f32 to vector<16x512xf32>
    %10 = arith.mulf %9, %8 : vector<16x512xf32>
    %cst_7 = arith.constant 0.707106769 : f32
    %11 = vector.broadcast %cst_7 : f32 to vector<16x512xf32>
    %12 = arith.mulf %8, %11 : vector<16x512xf32>
    %13 = math.erf %12 : vector<16x512xf32>
    %cst_8 = arith.constant 1.000000e+00 : f32
    %14 = vector.broadcast %cst_8 : f32 to vector<16x512xf32>
    %15 = arith.addf %14, %13 : vector<16x512xf32>
    %16 = arith.mulf %10, %15 : vector<16x512xf32>
    %c0_9 = arith.constant 0 : index
    %c0_10 = arith.constant 0 : index
    %17 = vector.load %arg7[%c0_9, %c0_10] : memref<16x128xf32, #tpu.memory_space<vmem>>, vector<16x128xf32>
    %c0_11 = arith.constant 0 : index
    %c0_12 = arith.constant 0 : index
    %18 = vector.load %arg5[%c0_11, %c0_12] : memref<512x128xf32, #tpu.memory_space<vmem>>, vector<512x128xf32>
    %cst_13 = arith.constant dense<0.000000e+00> : vector<16x128xf32>
    %19 = tpu.matmul %16, %18, %cst_13 {dimension_numbers = #tpu.dot_dimension_numbers<[1], [0], [0], [1], [0, 0, 1, 1], [], []>} : vector<16x512xf32>, vector<512x128xf32>, vector<16x128xf32> -> vector<16x128xf32>
    %20 = arith.addf %17, %19 : vector<16x128xf32>
    %c0_14 = arith.constant 0 : index
    %c0_15 = arith.constant 0 : index
    %21 = vector.load %arg7[%c0_14, %c0_15] : memref<16x128xf32, #tpu.memory_space<vmem>>, vector<16x128xf32>
    tpu.vector_store %arg7[%c0_14, %c0_15], %20 {strides = array<i32>} : memref<16x128xf32, #tpu.memory_space<vmem>>, vector<16x128xf32>,
    %c0_i32_16 = arith.constant 0 : i32
    %22 = arith.cmpi eq, %arg1, %c0_i32_16 : i32
    %23 = arith.extui %22 : i1 to i32
    %c0_i32_17 = arith.constant 0 : i32
    %24 = arith.cmpi ne, %23, %c0_i32_17 : i32
    scf.if %24 {
      %c0_18 = arith.constant 0 : index
      %c0_19 = arith.constant 0 : index
      %25 = vector.load %arg7[%c0_18, %c0_19] : memref<16x128xf32, #tpu.memory_space<vmem>>, vector<16x128xf32>
      %c0_20 = arith.constant 0 : index
      %c0_21 = arith.constant 0 : index
      %26 = vector.load %arg6[%c0_20, %c0_21] : memref<1x128xf32, #tpu.memory_space<vmem>>, vector<1x128xf32>
      %27 = vector.broadcast %26 : vector<1x128xf32> to vector<16x128xf32>
      %28 = arith.addf %25, %27 : vector<16x128xf32>
      %c0_22 = arith.constant 0 : index
      %c0_23 = arith.constant 0 : index
      %29 = vector.load %arg7[%c0_22, %c0_23] : memref<16x128xf32, #tpu.memory_space<vmem>>, vector<16x128xf32>
      tpu.vector_store %arg7[%c0_22, %c0_23], %28 {strides = array<i32>} : memref<16x128xf32, #tpu.memory_space<vmem>>, vector<16x128xf32>,
    } else {
    }
    return
  }
  func.func @transform_0(%arg0: i32, %arg1: i32) -> (i32, i32) {
    %c0_i32 = arith.constant 0 : i32
    %c0_i32_0 = arith.constant 0 : i32
    return %arg0, %c0_i32 : i32, i32
  }
  func.func @transform_1(%arg0: i32, %arg1: i32) -> (i32, i32) {
    %c0_i32 = arith.constant 0 : i32
    %c0_i32_0 = arith.constant 0 : i32
    return %c0_i32, %arg1 : i32, i32
  }
  func.func @transform_2(%arg0: i32, %arg1: i32) -> (i32, i32) {
    %c0_i32 = arith.constant 0 : i32
    %c0_i32_0 = arith.constant 0 : i32
    return %c0_i32, %arg1 : i32, i32
  }
  func.func @transform_3(%arg0: i32, %arg1: i32) -> (i32, i32) {
    %c0_i32 = arith.constant 0 : i32
    %c0_i32_0 = arith.constant 0 : i32
    return %arg1, %c0_i32 : i32, i32
  }
  func.func @transform_4(%arg0: i32, %arg1: i32) -> (i32, i32) {
    %c0_i32 = arith.constant 0 : i32
    %c0_i32_0 = arith.constant 0 : i32
    %c0_i32_1 = arith.constant 0 : i32
    return %c0_i32, %c0_i32_0 : i32, i32
  }
  func.func @transform_5(%arg0: i32, %arg1: i32) -> (i32, i32) {
    %c0_i32 = arith.constant 0 : i32
    %c0_i32_0 = arith.constant 0 : i32
    return %arg0, %c0_i32 : i32, i32
  }
}

</mosaic_0001>

<bundles_post_ra>
// kernel: tpu_custom_call.1
= control target key start
LH: loop header
LB: loop body
LE: loop exit
PB: predicated region body
PF: predicated region fallthrough
CT: control target
= control target key end

     0   :  { %10 = vsyncpa [#allocation3], 0  ;;  %s1804_s0 = inlined_call_operand.hbm [shape: f32[32,128], index: 0, kind: input, shape index: {}]   ;;  %s1805_s1 = inlined_call_operand.hbm [shape: f32[128,512], index: 1, kind: input, shape index: {}]   ;;  %s1806_s2 = inlined_call_operand.vmem [shape: f32[1,512], index: 2, kind: input, shape index: {}]   ;;  %s1807_s3 = inlined_call_operand.hbm [shape: f32[512,128], index: 3, kind: input, shape index: {}]   ;;  %s1808_s4 = inlined_call_operand.vmem [shape: f32[1,128], index: 4, kind: input, shape index: {}]   ;;  %s1809_s5 = inlined_call_operand.hbm [shape: f32[32,128], index: 5, kind: output, shape index: {}]  }
   0x1   :  { %12 = vsyncpa [#allocation3 + $0x1], 0 }
   0x2   :  { %13 = vsyncpa [#allocation6], 0 }
   0x3   :  { %14 = vsyncpa [#allocation4], 0 }
   0x4   :  { %16 = vsyncpa [#allocation4 + $0x1], 0  ;;  %s1525_s18 = smov 0   ;;  %s1527_s19 = smov 0  }
   0x5   :  { %s1529_s20 = smov 0   ;;  %s1531_s21 = smov 0  }
   0x6   :  { %s1533_s22 = smov 0   ;;  %s1535_s23 = smov 0  }
   0x7 LB: > { %s977_s24 = sadd.s32 4294967295, %s1482_s23   ;;  %s978_s25 = sadd.s32 4294967294, %s1482_s23   ;;  %s1482_s23 = sphi %s1535_s23, %s22_s23   ;;  %s1478_s22 = sphi %s1533_s22, %s1833_s22   ;;  %s1474_s21 = sphi %s1531_s21, %s1832_s21   ;;  %s1470_s20 = sphi %s1529_s20, %s1831_s20   ;;  %s1466_s19 = sphi %s1527_s19, %s1830_s19   ;;  %s1462_s18 = sphi %s1525_s18, %s1829_s18  }
   0x8   : > { %p54_p0 = scmp.ne.s32.totalorder %s1466_s19, %s1462_s18  ;;  %p1559_p1 = scmp.eq.s32.totalorder %s977_s24, 0 }
   0x9   : > { %p1563_p2 = scmp.eq.s32.totalorder %s977_s24, 1  ;;  %p183_p3 = scmp.eq.s32.totalorder %s978_s25, 1 }
   0xa   : > { %s1815_s26 = scalar_select %p1559_p1, 1, 0 }
   0xb   : > { %p1569_p4 = por %p1559_p1, %p54_p0  ;;  %p979_p5 = scmp.ge.s32.totalorder %s1482_s23, 1 }
   0xc   : > { %p1574_p6 = por %p183_p3, %p54_p0  ;;  %p190_p7 = scmp.lt.s32.totalorder %s1482_s23, 3 }
   0xd   : > { %s1817_s28 = scalar_select %p1569_p4, 1, 0 }
   0xe   : > { %s1818_s29 = scalar_select %p1574_p6, 1, 0 }
   0xf   : > { %p1579_p8 = pnand %p979_p5, %p190_p7  ;;  %s1484_s6 = smov [#allocation5]  }
  0x10   : > { %s205_s7 = sshll.u32 %s1484_s6, 4  ;;  %s1485_s9 = smov [#allocation7]   ;;  %s1583_s7 = int_to_ptr.vmem [resolvable:$true] %s205_s7 }
  0x11   : > { %p1216_p9 = pneg %p1579_p8  ;;  %s229_s10 = sshll.u32 %s1485_s9, 4  ;;  %s1594_s10 = int_to_ptr.vmem [resolvable:$true] %s229_s10 }
  0x12   : > { %s1310_s13 = scalar_lea.hbm %s1805_s1, 8192 }
  0x13   : > { %p1590_p11 = pnand %p1216_p9, %p1559_p1  ;;  %p1311_p12 = scmp.ne.s32.totalorder %s1805_s1, %s1310_s13 }
  0x14   : > { %p1317_p5 = scmp.lt.u32.totalorder %s1310_s13, %s1805_s1 }
  0x15   : > { %p1312_p13 = pneg %p1590_p11 }
  0x17   : > { %p1313_p0 = pnand %p1312_p13, %p1311_p12 }
  0x19   : > { %p1314_p3 = pneg %p1313_p0 }
  0x1b   : > { %p1319_p7 = pnand %p1317_p5, %p1314_p3 }
  0x1d   : > { %1322 = shalt.err (!%p1319_p7)
}
  0x1e   : > { %s1323_s24 = scalar_lea.vmem %s1583_s7, 8192  ;;  %p1331_p1 = scmp.lt.s32.totalorder %s1583_s7, %s1583_s7 }
  0x1f   : > { %p1324_p9 = scmp.ne.s32.totalorder %s1583_s7, %s1323_s24  ;;  %p1332_p12 = scmp.lt.s32.totalorder %s1323_s24, %s1323_s24 }
  0x21   : > { %p1326_p10 = pnand %p1324_p9, %p1312_p13  ;;  %p1333_p0 = por %p1332_p12, %p1331_p1 }
  0x23   : > { %p1327_p6 = pneg %p1326_p10 }
  0x25   : > { %p1334_p4 = pnand %p1333_p0, %p1327_p6 }
  0x27   : > { %1337 = shalt.err (!%p1334_p4)
}
  0x28   : > { %s1486_s25 = smov 512   ;;  %s1487_s6 = smov 32  }
  0x29   : > { %1219 = dma.hbm_to_vmem [thread:$0]  (!%p1590_p11), %s1805_s1, 8192, %s1583_s7, [#allocation6], %s1486_s25, %s1486_s25, %s1487_s6  }
  0x2a   : > { %s1338_s14 = scalar_lea.hbm %s1807_s3, 8192 }
  0x2b   : > { %p1339_p1 = scmp.ne.s32.totalorder %s1807_s3, %s1338_s14  ;;  %p1345_p10 = scmp.lt.u32.totalorder %s1338_s14, %s1807_s3 }
  0x2d   : > { %p1341_p4 = pnand %p1339_p1, %p1312_p13 }
  0x2f   : > { %p1342_p6 = pneg %p1341_p4 }
  0x31   : > { %p1347_p3 = pnand %p1345_p10, %p1342_p6 }
  0x33   : > { %1350 = shalt.err (!%p1347_p3)
}
  0x34   : > { %s1351_s7 = scalar_lea.vmem %s1594_s10, 8192  ;;  %p1359_p12 = scmp.lt.s32.totalorder %s1594_s10, %s1594_s10 }
  0x35   : > { %p1352_p5 = scmp.ne.s32.totalorder %s1594_s10, %s1351_s7  ;;  %p1360_p0 = scmp.lt.s32.totalorder %s1351_s7, %s1351_s7 }
  0x37   : > { %p1354_p7 = pnand %p1352_p5, %p1312_p13  ;;  %p1361_p1 = por %p1360_p0, %p1359_p12 }
  0x39   : > { %p1355_p9 = pneg %p1354_p7 }
  0x3b   : > { %p1362_p4 = pnand %p1361_p1, %p1355_p9 }
  0x3d   : > { %1365 = shalt.err (!%p1362_p4)
}
  0x3e   : > { %s1813_s25 = smov 128   ;;  %s1489_s6 = smov 8  }
  0x3f   : > { %1222 = dma.hbm_to_vmem [thread:$0]  (!%p1590_p11), %s1807_s3, 8192, %s1594_s10, [#allocation6], %s1813_s25, %s1813_s25, %s1489_s6  }
  0x40   : > { %s34_s12 = sadd.s32 1, %s1478_s22  ;;  %s41_s13 = sadd.s32 1, %s1470_s20 }
  0x41   : > { %p36_p13 = scmp.ge.s32.totalorder %s34_s12, 2  ;;  %p48_p6 = scmp.ne.s32.totalorder %s1470_s20, %s1466_s19 }
  0x42   : > { %p49_p10 = scmp.eq.s32.totalorder %s1482_s23, 0  ;;  %p1233_p3 = scmp.lt.s32.totalorder %s1482_s23, 2 }
  0x43   : > { %s1835_s12 = smov (%p36_p13, %s34_s12), 0  ;;  %p1661_p7 = por %p1563_p2, %p48_p6 }
  0x44   : > { %p50_p5 = por %p49_p10, %p48_p6  ;;  %s38_s14 = ssub.s32 %s1478_s22, %s1835_s12 }
  0x45   : > { %s1821_s8 = scalar_select %p1661_p7, 1, 0 }
  0x46   : > { %s246_s15 = sand.u32 1, %s1470_s20   ;;  %p39_p9 = scmp.eq.s32.totalorder %s38_s14, 0 }
  0x47   : > { %s984_s10 = sshll.u32 %s246_s15, 4  ;;  %s998_s16 = sshll.u32 %s1478_s22, 8 }
  0x48   : > { %s1670_s17 = scalar_select %p39_p9, %s1470_s20, %s41_s13  }
  0x49   : > { %s1675_s9 = scalar_lea.hbm %s1804_s0, %s998_s16  ;;  %s250_s27 = scalar_lea.vmem [#allocation2], %s984_s10 }
  0x4a   : > { %s257_s11 = sshll.u32 %s250_s27, 4  ;;  %p1679_p2 = pnand %p1233_p3, %p50_p5  ;;  %s1683_s11 = int_to_ptr.vmem [resolvable:$true] %s257_s11 }
  0x4b   : > { %s1685_s13 = scalar_lea.sflag [#allocation3], %s246_s15  ;;  %s1366_s14 = scalar_lea.hbm %s1675_s9, 256 }
  0x4c   : > { %p1367_p11 = scmp.ne.s32.totalorder %s1675_s9, %s1366_s14  ;;  %p1368_p12 = pneg %p1679_p2 }
  0x4d   : > { %s1371_s24 = scalar_lea.hbm %s1804_s0, 512  ;;  %p1372_p4 = scmp.lt.u32.totalorder %s1675_s9, %s1804_s0 }
  0x4e   : > { %p1369_p0 = pnand %p1368_p12, %p1367_p11  ;;  %p1373_p13 = scmp.lt.u32.totalorder %s1371_s24, %s1366_s14 }
  0x4f   : > { %p1375_p10 = scmp.lt.u32.totalorder %s1366_s14, %s1675_s9 }
  0x50   : > { %p1370_p1 = pneg %p1369_p0  ;;  %p1374_p6 = por %p1373_p13, %p1372_p4 }
  0x52   : > { %p1376_p3 = por %p1375_p10, %p1374_p6 }
  0x54   : > { %p1377_p5 = pnand %p1376_p3, %p1370_p1 }
  0x56   : > { %1380 = shalt.err (!%p1377_p5)
}
  0x57   : > { %s1381_s15 = scalar_lea.vmem %s1683_s11, 256  ;;  %s1490_s10 = smov [#allocation2]  }
  0x58   : > { %p1382_p9 = scmp.ne.s32.totalorder %s1683_s11, %s1381_s15  ;;  %s1386_s16 = sshll.u32 %s1490_s10, 4  ;;  %s1387_s16 = int_to_ptr.vmem [resolvable:$false] %s1386_s16 }
  0x59   : > { %s1388_s7 = scalar_lea.vmem %s1387_s16, 512  ;;  %p1389_p7 = scmp.lt.s32.totalorder %s1683_s11, %s1387_s16 }
  0x5a   : > { %p1384_p11 = pnand %p1382_p9, %p1368_p12  ;;  %p1390_p4 = scmp.lt.s32.totalorder %s1388_s7, %s1381_s15 }
  0x5c   : > { %p1385_p0 = pneg %p1384_p11  ;;  %p1391_p13 = por %p1390_p4, %p1389_p7 }
  0x5e   : > { %p1392_p6 = pnand %p1391_p13, %p1385_p0 }
  0x60   : > { %1395 = shalt.err (!%p1392_p6)
}
  0x61   : > { %s1823_s14 = smov 128   ;;  %269 = sbr.rel (%p1579_p8) target bundleno = 617 (0x269), region = 40 }
  0x62   : > { %1226 = dma.hbm_to_vmem [thread:$0]  (!%p1679_p2), %s1675_s9, 256, %s1683_s11, %s1685_s13, %s1823_s14, %s1823_s14, %s1489_s6  }
  0x63   : > { %s1719_s24 = sand.u32 (!%p1579_p8), 1, %s1466_s19   ;;  %p1824_p7 = scmp.ne.s32.totalorder (!%p1579_p8), %s1817_s28, 0 }
  0x64   : > { %s988_s27 = sshll.u32 (!%p1579_p8), %s1719_s24, 4  ;;  %s272_s15 = scalar_lea.sflag (!%p1579_p8), [#allocation3], %s1719_s24 }
  0x65   : > { %s1725_s25 = scalar_lea.vmem (!%p1579_p8), [#allocation2], %s988_s27 }
  0x68   : > { %1449 = dma.done.wait (%p1824_p7), %s272_s15, 256  }
  0x69   : > { %1451 = vsyncadd (%p1824_p7), %s272_s15, 4294967040  ;;  %p1825_p2 = scmp.ne.s32.totalorder %s1815_s26, 0 }
  0x6b   : > { %1453 = dma.done.wait (%p1825_p2), [#allocation6], 16384  }
  0x6c   : > { %1455 = vsyncadd (%p1825_p2), [#allocation6], 4294950912  ;;  %v1491_v0 = vmov 0.0   ;;  %v332_v1 = vld [vmem:[#allocation5 + $0x8] sm:$0xff]  ;;  %v334_v3 = vld [vmem:[#allocation5 + $0x18] sm:$0xff]  ;;  %s999_s9 = sshll.u32 %s1474_s21, 8 }
  0x6d   : > { %481 = vmatprep.mubr.f32.mxu0 %v1491_v0  ;;  %558 = vmatprep.mubr.f32.mxu1 %v1491_v0  ;;  %v336_v2 = vld [vmem:[#allocation5 + $0x28] sm:$0xff]  ;;  %v338_v5 = vld [vmem:[#allocation5 + $0x38] sm:$0xff]  ;;  %v331_v6 = vld [vmem:[#allocation5] sm:$0xff]  ;;  %s313_s11 = scalar_lea.vmem [#allocation8], %s988_s27  ;;  %s1753_s7 = scalar_lea.hbm %s1809_s5, %s999_s9 }
  0x6e   : > { %v1076_v4 = vpack.c.bf16 %v336_v2, %v332_v1  ;;  %v335_v7 = vld [vmem:[#allocation5 + $0x20] sm:$0xff]  ;;  %v1108_v8 = vpack.c.bf16 %v338_v5, %v334_v3  ;;  %v333_v10 = vld [vmem:[#allocation5 + $0x10] sm:$0xff]  ;;  %v340_v12 = vld [vmem:[#allocation5 + $0x48] sm:$0xff]  ;;  %s861_s13 = sshll.u32 %s313_s11, 4  ;;  %s848_s14 = scalar_lea.sflag [#allocation4], %s1719_s24  ;;  %s1755_s13 = int_to_ptr.vmem [resolvable:$true] %s861_s13 }
  0x6f   : > { %v1078_v9 = vpack.c.bf16 %v335_v7, %v331_v6  ;;  %v337_v11 = vld [vmem:[#allocation5 + $0x30] sm:$0xff]  ;;  %v344_v14 = vld [vmem:[#allocation5 + $0x68] sm:$0xff]  ;;  %v342_v15 = vld [vmem:[#allocation5 + $0x58] sm:$0xff]  ;;  %s1396_s15 = scalar_lea.vmem %s1755_s13, 256  ;;  %p1826_p12 = scmp.ne.s32.totalorder %s1821_s8, 0 }
  0x70   : > { %1077 = vmatprep.subr.bf16.mxu0 %v1076_v4  ;;  %v1110_v13 = vpack.c.bf16 %v337_v11, %v333_v10  ;;  %v346_v16 = vld [vmem:[#allocation5 + $0x78] sm:$0xff]  ;;  %1109 = vmatprep.subr.bf16.mxu1 %v1108_v8  ;;  %v1080_v17 = vpack.c.bf16 %v344_v14, %v340_v12  ;;  %v339_v19 = vld [vmem:[#allocation5 + $0x40] sm:$0xff]  ;;  %v341_v21 = vld [vmem:[#allocation5 + $0x50] sm:$0xff]  ;;  %p1397_p8 = scmp.ne.s32.totalorder %s1755_s13, %s1396_s15  ;;  %s1492_s21 = smov [#allocation8]  }
  0x71   : > { %1079 = vmatpush1.bf16.msra.mxu0 %v1078_v9  ;;  %v1112_v18 = vpack.c.bf16 %v346_v16, %v342_v15  ;;  %v343_v20 = vld [vmem:[#allocation5 + $0x60] sm:$0xff]  ;;  %v345_v23 = vld [vmem:[#allocation5 + $0x70] sm:$0xff]  ;;  %v348_v24 = vld [vmem:[#allocation5 + $0x88] sm:$0xff]  ;;  %s1400_s27 = sshll.u32 %s1492_s21, 4  ;;  %s1401_s27 = int_to_ptr.vmem [resolvable:$false] %s1400_s27 }
  0x72   : > { %1111 = vmatpush1.bf16.msra.mxu1 %v1110_v13  ;;  %v1082_v22 = vpack.c.bf16 %v343_v20, %v339_v19  ;;  %v352_v25 = vld [vmem:[#allocation5 + $0xa8] sm:$0xff]  ;;  %1081 = vmatprep.subr.bf16.mxu0 %v1080_v17  ;;  %v1114_v26 = vpack.c.bf16 %v345_v23, %v341_v21  ;;  %v350_v28 = vld [vmem:[#allocation5 + $0x98] sm:$0xff]  ;;  %v347_v30 = vld [vmem:[#allocation5 + $0x80] sm:$0xff]  ;;  %p1398_p1 = pnand %p1397_p8, %p1826_p12  ;;  %p1403_p3 = scmp.lt.s32.totalorder %s1755_s13, %s1401_s27 }
  0x73   : > { %1113 = vmatprep.subr.bf16.mxu1 %v1112_v18  ;;  %v1084_v27 = vpack.c.bf16 %v352_v25, %v348_v24  ;;  %v354_v29 = vld [vmem:[#allocation5 + $0xb8] sm:$0xff]  ;;  %v351_v32 = vld [vmem:[#allocation5 + $0xa0] sm:$0xff]  ;;  %v349_v33 = vld [vmem:[#allocation5 + $0x90] sm:$0xff] }
  0x74   : > { %v1116_v31 = vpack.c.bf16 %v354_v29, %v350_v28  ;;  %v353_v34 = vld [vmem:[#allocation5 + $0xb0] sm:$0xff]  ;;  %v1086_v35 = vpack.c.bf16 %v351_v32, %v347_v30  ;;  %v356_v36 = vld [vmem:[#allocation5 + $0xc8] sm:$0xff]  ;;  %v358_v38 = vld [vmem:[#allocation5 + $0xd8] sm:$0xff]  ;;  %p1399_p10 = pneg %p1398_p1 }
  0x75   : > { %1083 = vmatpush1.bf16.msra.mxu0 %v1082_v22  ;;  %v360_v37 = vld [vmem:[#allocation5 + $0xe8] sm:$0xff]  ;;  %v1118_v39 = vpack.c.bf16 %v353_v34, %v349_v33  ;;  %v362_v41 = vld [vmem:[#allocation5 + $0xf8] sm:$0xff]  ;;  %v355_v42 = vld [vmem:[#allocation5 + $0xc0] sm:$0xff] }
  0x76   : > { %1115 = vmatpush1.bf16.msra.mxu1 %v1114_v26  ;;  %1085 = vmatprep.subr.bf16.mxu0 %v1084_v27  ;;  %v1088_v40 = vpack.c.bf16 %v360_v37, %v356_v36  ;;  %v359_v43 = vld [vmem:[#allocation5 + $0xe0] sm:$0xff]  ;;  %v1120_v44 = vpack.c.bf16 %v362_v41, %v358_v38  ;;  %v357_v45 = vld [vmem:[#allocation5 + $0xd0] sm:$0xff]  ;;  %v364_v47 = vld [vmem:[#allocation5 + $0x108] sm:$0xff] }
  0x77   : > { %1117 = vmatprep.subr.bf16.mxu1 %v1116_v31  ;;  %v361_v46 = vld [vmem:[#allocation5 + $0xf0] sm:$0xff]  ;;  %v368_v48 = vld [vmem:[#allocation5 + $0x128] sm:$0xff]  ;;  %v366_v49 = vld [vmem:[#allocation5 + $0x118] sm:$0xff]  ;;  %v1090_v51 = vpack.c.bf16 %v359_v43, %v355_v42 }
  0x78   : > { %v370_v50 = vld [vmem:[#allocation5 + $0x138] sm:$0xff]  ;;  %v1122_v52 = vpack.c.bf16 %v361_v46, %v357_v45  ;;  %v1092_v53 = vpack.c.bf16 %v368_v48, %v364_v47  ;;  %v363_v54 = vld [vmem:[#allocation5 + $0x100] sm:$0xff]  ;;  %v365_v56 = vld [vmem:[#allocation5 + $0x110] sm:$0xff] }
  0x79   : > { %1087 = vmatpush1.bf16.msra.mxu0 %v1086_v35  ;;  %v367_v55 = vld [vmem:[#allocation5 + $0x120] sm:$0xff]  ;;  %v1124_v57 = vpack.c.bf16 %v370_v50, %v366_v49  ;;  %v369_v58 = vld [vmem:[#allocation5 + $0x130] sm:$0xff]  ;;  %v372_v59 = vld [vmem:[#allocation5 + $0x148] sm:$0xff] }
  0x7a   : > { %1119 = vmatpush1.bf16.msra.mxu1 %v1118_v39  ;;  %1089 = vmatprep.subr.bf16.mxu0 %v1088_v40  ;;  %v376_v60 = vld [vmem:[#allocation5 + $0x168] sm:$0xff]  ;;  %v374_v61 = vld [vmem:[#allocation5 + $0x158] sm:$0xff]  ;;  %v1094_v63 = vpack.c.bf16 %v367_v55, %v363_v54  ;;  %v1126_v1 = vpack.c.bf16 %v369_v58, %v365_v56  ;;  %v371_v3 = vld [vmem:[#allocation5 + $0x140] sm:$0xff] }
  0x7b   : > { %1121 = vmatprep.subr.bf16.mxu1 %v1120_v44  ;;  %v378_v62 = vld [vmem:[#allocation5 + $0x178] sm:$0xff]  ;;  %v1096_v2 = vpack.c.bf16 %v376_v60, %v372_v59  ;;  %v375_v4 = vld [vmem:[#allocation5 + $0x160] sm:$0xff]  ;;  %v373_v5 = vld [vmem:[#allocation5 + $0x150] sm:$0xff] }
  0x7c   : > { %v1128_v6 = vpack.c.bf16 %v378_v62, %v374_v61  ;;  %v377_v7 = vld [vmem:[#allocation5 + $0x170] sm:$0xff]  ;;  %v380_v8 = vld [vmem:[#allocation5 + $0x188] sm:$0xff]  ;;  %v382_v10 = vld [vmem:[#allocation5 + $0x198] sm:$0xff]  ;;  %v1098_v12 = vpack.c.bf16 %v375_v4, %v371_v3 }
  0x7d   : > { %1091 = vmatpush1.bf16.msra.mxu0 %v1090_v51  ;;  %v384_v9 = vld [vmem:[#allocation5 + $0x1a8] sm:$0xff]  ;;  %v386_v11 = vld [vmem:[#allocation5 + $0x1b8] sm:$0xff]  ;;  %v1130_v13 = vpack.c.bf16 %v377_v7, %v373_v5  ;;  %v379_v15 = vld [vmem:[#allocation5 + $0x180] sm:$0xff] }
  0x7e   : > { %1123 = vmatpush1.bf16.msra.mxu1 %v1122_v52  ;;  %1093 = vmatprep.subr.bf16.mxu0 %v1092_v53  ;;  %v1100_v14 = vpack.c.bf16 %v384_v9, %v380_v8  ;;  %v383_v16 = vld [vmem:[#allocation5 + $0x1a0] sm:$0xff]  ;;  %v381_v17 = vld [vmem:[#allocation5 + $0x190] sm:$0xff]  ;;  %v1132_v18 = vpack.c.bf16 %v386_v11, %v382_v10  ;;  %v388_v20 = vld [vmem:[#allocation5 + $0x1c8] sm:$0xff] }
  0x7f   : > { %1125 = vmatprep.subr.bf16.mxu1 %v1124_v57  ;;  %v385_v19 = vld [vmem:[#allocation5 + $0x1b0] sm:$0xff]  ;;  %v392_v21 = vld [vmem:[#allocation5 + $0x1e8] sm:$0xff]  ;;  %v390_v22 = vld [vmem:[#allocation5 + $0x1d8] sm:$0xff]  ;;  %v1102_v24 = vpack.c.bf16 %v383_v16, %v379_v15 }
  0x80   : > { %v394_v23 = vld [vmem:[#allocation5 + $0x1f8] sm:$0xff]  ;;  %v1134_v25 = vpack.c.bf16 %v385_v19, %v381_v17  ;;  %v1104_v26 = vpack.c.bf16 %v392_v21, %v388_v20  ;;  %v387_v27 = vld [vmem:[#allocation5 + $0x1c0] sm:$0xff]  ;;  %v389_v29 = vld [vmem:[#allocation5 + $0x1d0] sm:$0xff] }
  0x81   : > { %1095 = vmatpush1.bf16.msra.mxu0 %v1094_v63  ;;  %v391_v28 = vld [vmem:[#allocation5 + $0x1e0] sm:$0xff]  ;;  %v1136_v30 = vpack.c.bf16 %v394_v23, %v390_v22  ;;  %v393_v31 = vld [vmem:[#allocation5 + $0x1f0] sm:$0xff]  ;;  %v630_v33 = vld [vmem:[#allocation7 + $0x88] sm:$0xff] }
  0x82   : > { %1127 = vmatpush1.bf16.msra.mxu1 %v1126_v1  ;;  %1097 = vmatprep.subr.bf16.mxu0 %v1096_v2  ;;  %v629_v32 = vld [vmem:[#allocation7 + $0x80] sm:$0xff]  ;;  %v662_v35 = vld [vmem:[#allocation7 + $0x188] sm:$0xff]  ;;  %v1106_v36 = vpack.c.bf16 %v391_v28, %v387_v27  ;;  %v1138_v37 = vpack.c.bf16 %v393_v31, %v389_v29  ;;  %v631_v44 = vld [vmem:[#allocation7 + $0x90] sm:$0xff] }
  0x83   : > { %1129 = vmatprep.subr.bf16.mxu1 %v1128_v6  ;;  %v661_v34 = vld [vmem:[#allocation7 + $0x180] sm:$0xff]  ;;  %v1140_v38 = vpack.c.bf16 %v630_v33, %v629_v32  ;;  %v614_v41 = vld [vmem:[#allocation7 + $0x8] sm:$0xff]  ;;  %v632_v45 = vld [vmem:[#allocation7 + $0x98] sm:$0xff] }
  0x84   : > { %v1172_v39 = vpack.c.bf16 %v662_v35, %v661_v34  ;;  %v613_v40 = vld [vmem:[#allocation7] sm:$0xff]  ;;  %v646_v43 = vld [vmem:[#allocation7 + $0x108] sm:$0xff]  ;;  %v663_v47 = vld [vmem:[#allocation7 + $0x190] sm:$0xff]  ;;  %v1144_v51 = vpack.c.bf16 %v632_v45, %v631_v44 }
  0x85   : > { %1099 = vmatpush1.bf16.msra.mxu0 %v1098_v12  ;;  %v645_v42 = vld [vmem:[#allocation7 + $0x100] sm:$0xff]  ;;  %v664_v48 = vld [vmem:[#allocation7 + $0x198] sm:$0xff]  ;;  %v1142_v49 = vpack.c.bf16 %v614_v41, %v613_v40  ;;  %v615_v52 = vld [vmem:[#allocation7 + $0x10] sm:$0xff] }
  0x86   : > { %1131 = vmatpush1.bf16.msra.mxu1 %v1130_v13  ;;  %1101 = vmatprep.subr.bf16.mxu0 %v1100_v14  ;;  %v329_v46 = vld [vmem:[%s1725_s25] sm:$0xff]  ;;  %v1174_v50 = vpack.c.bf16 %v646_v43, %v645_v42  ;;  %v616_v53 = vld [vmem:[#allocation7 + $0x18] sm:$0xff]  ;;  %v1176_v55 = vpack.c.bf16 %v664_v48, %v663_v47  ;;  %v634_v58 = vld [vmem:[#allocation7 + $0xa8] sm:$0xff] }
  0x87   : > { %1133 = vmatprep.subr.bf16.mxu1 %v1132_v18  ;;  %v647_v54 = vld [vmem:[#allocation7 + $0x110] sm:$0xff]  ;;  %v648_v56 = vld [vmem:[#allocation7 + $0x118] sm:$0xff]  ;;  %v633_v57 = vld [vmem:[#allocation7 + $0xa0] sm:$0xff]  ;;  %v1146_v62 = vpack.c.bf16 %v616_v53, %v615_v52 }
  0x88   : > { %v330_v59 = vld [vmem:[%s1725_s25 + $0x8] sm:$0xff]  ;;  %v665_v60 = vld [vmem:[#allocation7 + $0x1a0] sm:$0xff]  ;;  %v1178_v63 = vpack.c.bf16 %v648_v56, %v647_v54  ;;  %v1148_v1 = vpack.c.bf16 %v634_v58, %v633_v57  ;;  %v667_v10 = vld [vmem:[#allocation7 + $0x1b0] sm:$0xff]  ;;  %s1402_s25 = scalar_lea.vmem %s1401_s27, 512 }
  0x89   : > { %1103 = vmatpush1.bf16.msra.mxu0 %v1102_v24  ;;  %v666_v61 = vld [vmem:[#allocation7 + $0x1a8] sm:$0xff]  ;;  %v617_v2 = vld [vmem:[#allocation7 + $0x20] sm:$0xff]  ;;  %v636_v9 = vld [vmem:[#allocation7 + $0xb8] sm:$0xff]  ;;  %p1404_p5 = scmp.lt.s32.totalorder %s1402_s25, %s1396_s15 }
  0x8a   : > { %1135 = vmatpush1.bf16.msra.mxu1 %v1134_v25  ;;  %1105 = vmatprep.subr.bf16.mxu0 %v1104_v26  ;;  %v618_v3 = vld [vmem:[#allocation7 + $0x28] sm:$0xff]  ;;  %v1180_v4 = vpack.c.bf16 %v666_v61, %v665_v60  ;;  %v649_v5 = vld [vmem:[#allocation7 + $0x120] sm:$0xff]  ;;  %v668_v12 = vld [vmem:[#allocation7 + $0x1b8] sm:$0xff] }
  0x8b   : > { %1137 = vmatprep.subr.bf16.mxu1 %v1136_v30  ;;  %v650_v6 = vld [vmem:[#allocation7 + $0x128] sm:$0xff]  ;;  %v1150_v7 = vpack.c.bf16 %v618_v3, %v617_v2  ;;  %v619_v13 = vld [vmem:[#allocation7 + $0x30] sm:$0xff]  ;;  %v620_v14 = vld [vmem:[#allocation7 + $0x38] sm:$0xff]  ;;  %v1184_v15 = vpack.c.bf16 %v668_v12, %v667_v10  ;;  %p1405_p9 = por %p1404_p5, %p1403_p3 }
  0x8c   : > { %v1182_v8 = vpack.c.bf16 %v650_v6, %v649_v5  ;;  %v1154_v16 = vpack.c.bf16 %v620_v14, %v619_v13  ;;  %v651_v17 = vld [vmem:[#allocation7 + $0x130] sm:$0xff]  ;;  %v652_v18 = vld [vmem:[#allocation7 + $0x138] sm:$0xff]  ;;  %v637_v20 = vld [vmem:[#allocation7 + $0xc0] sm:$0xff]  ;;  %v397_v5 = vlaneseq }
  0x8d   : > { %1107 = vmatpush1.bf16.msra.mxu0 %v1106_v36  ;;  %v1186_v19 = vpack.c.bf16 %v652_v18, %v651_v17  ;;  %v638_v21 = vld [vmem:[#allocation7 + $0xc8] sm:$0xff]  ;;  %v669_v22 = vld [vmem:[#allocation7 + $0x1c0] sm:$0xff]  ;;  %v639_v32 = vld [vmem:[#allocation7 + $0xd0] sm:$0xff]  ;;  %p1406_p11 = pnand %p1405_p9, %p1399_p10 }
  0x8e   : > { %1139 = vmatpush1.bf16.msra.mxu1 %v1138_v37  ;;  %1141 = vmatprep.subr.bf16.mxu0 %v1140_v38  ;;  %v1156_v23 = vpack.c.bf16 %v638_v21, %v637_v20  ;;  %v670_v24 = vld [vmem:[#allocation7 + $0x1c8] sm:$0xff]  ;;  %v621_v25 = vld [vmem:[#allocation7 + $0x40] sm:$0xff]  ;;  %v640_v33 = vld [vmem:[#allocation7 + $0xd8] sm:$0xff]  ;;  %v398_v6 = vshrl.u32 %v397_v5, 7 }
  0x8f   : > { %1173 = vmatprep.subr.bf16.mxu1 %v1172_v39  ;;  %v622_v26 = vld [vmem:[#allocation7 + $0x48] sm:$0xff]  ;;  %v1188_v27 = vpack.c.bf16 %v670_v24, %v669_v22  ;;  %v653_v29 = vld [vmem:[#allocation7 + $0x140] sm:$0xff]  ;;  %v671_v34 = vld [vmem:[#allocation7 + $0x1d0] sm:$0xff]  ;;  %v1160_v35 = vpack.c.bf16 %v640_v33, %v639_v32 }
  0x90   : > { %482 = vmatmul.mubr.f32.vlgmr.msra.gmra.mrb[0].mxu0 %v329_v46  ;;  %v1158_v28 = vpack.c.bf16 %v622_v26, %v621_v25  ;;  %v654_v30 = vld [vmem:[#allocation7 + $0x148] sm:$0xff]  ;;  %v672_v36 = vld [vmem:[#allocation7 + $0x1d8] sm:$0xff]  ;;  %v623_v37 = vld [vmem:[#allocation7 + $0x50] sm:$0xff]  ;;  %v411_v10 = vsub.s32 3, %v398_v6 }
  0x91   : > { %559 = vmatmul.mubr.f32.vlgmr.msra.gmra.mrb[0].mxu1 %v329_v46  ;;  %487 = vmatprep.mubr.f32.mxu0 %v1491_v0  ;;  %v1190_v31 = vpack.c.bf16 %v654_v30, %v653_v29  ;;  %v624_v38 = vld [vmem:[#allocation7 + $0x58] sm:$0xff]  ;;  %v1192_v39 = vpack.c.bf16 %v672_v36, %v671_v34  ;;  %v655_v41 = vld [vmem:[#allocation7 + $0x150] sm:$0xff]  ;;  %v641_v44 = vld [vmem:[#allocation7 + $0xe0] sm:$0xff] }
  0x92   : > { %564 = vmatprep.mubr.f32.mxu1 %v1491_v0  ;;  %1143 = vmatpush3.bf16.msra.mxu0 %v1142_v49  ;;  %v635_v0 = vld [vmem:[#allocation7 + $0xb0] sm:$0xff]  ;;  %v1162_v40 = vpack.c.bf16 %v624_v38, %v623_v37  ;;  %v656_v42 = vld [vmem:[#allocation7 + $0x158] sm:$0xff]  ;;  %v642_v45 = vld [vmem:[#allocation7 + $0xe8] sm:$0xff] }
  0x93   : > { %1175 = vmatpush3.bf16.msra.mxu1 %v1174_v50  ;;  %1145 = vmatprep.subr.bf16.mxu0 %v1144_v51  ;;  %v1152_v11 = vpack.c.bf16 %v636_v9, %v635_v0  ;;  %v1194_v43 = vpack.c.bf16 %v656_v42, %v655_v41  ;;  %v673_v46 = vld [vmem:[#allocation7 + $0x1e0] sm:$0xff]  ;;  %v1164_v47 = vpack.c.bf16 %v642_v45, %v641_v44  ;;  %v674_v48 = vld [vmem:[#allocation7 + $0x1e8] sm:$0xff]  ;;  %v643_v56 = vld [vmem:[#allocation7 + $0xf0] sm:$0xff]  ;;  %v407_v0 = vsub.s32 2, %v398_v6 }
  0x94   : > { %488 = vmatmul.mubr.f32.gmra.mrb[2].mxu0 %v330_v59  ;;  %1177 = vmatprep.subr.bf16.mxu1 %v1176_v55  ;;  %v625_v49 = vld [vmem:[#allocation7 + $0x60] sm:$0xff]  ;;  %v626_v50 = vld [vmem:[#allocation7 + $0x68] sm:$0xff]  ;;  %v1196_v51 = vpack.c.bf16 %v674_v48, %v673_v46  ;;  %v644_v57 = vld [vmem:[#allocation7 + $0xf8] sm:$0xff]  ;;  %v403_v9 = vsub.s32 1, %v398_v6 }
  0x95   : > { %565 = vmatmul.mubr.f32.gmra.mrb[2].mxu1 %v330_v59  ;;  %v1166_v52 = vpack.c.bf16 %v626_v50, %v625_v49  ;;  %v657_v53 = vld [vmem:[#allocation7 + $0x160] sm:$0xff]  ;;  %v658_v54 = vld [vmem:[#allocation7 + $0x168] sm:$0xff]  ;;  %v675_v58 = vld [vmem:[#allocation7 + $0x1f0] sm:$0xff]  ;;  %v1168_v59 = vpack.c.bf16 %v644_v57, %v643_v56 }
  0x96   : > { %1147 = vmatpush3.bf16.msra.mxu0 %v1146_v62  ;;  %v1198_v55 = vpack.c.bf16 %v658_v54, %v657_v53  ;;  %v676_v60 = vld [vmem:[#allocation7 + $0x1f8] sm:$0xff]  ;;  %v627_v61 = vld [vmem:[#allocation7 + $0x70] sm:$0xff] }
  0x97   : > { %1179 = vmatpush3.bf16.msra.mxu1 %v1178_v63  ;;  %1149 = vmatprep.subr.bf16.mxu0 %v1148_v1  ;;  %v628_v62 = vld [vmem:[#allocation7 + $0x78] sm:$0xff]  ;;  %v1200_v63 = vpack.c.bf16 %v676_v60, %v675_v58  ;;  %v659_v2 = vld [vmem:[#allocation7 + $0x170] sm:$0xff] }
  0x98   : > { %1181 = vmatprep.subr.bf16.mxu1 %v1180_v4  ;;  %v1170_v1 = vpack.c.bf16 %v628_v62, %v627_v61  ;;  %v660_v3 = vld [vmem:[#allocation7 + $0x178] sm:$0xff] }
  0x99   : > { %v1202_v4 = vpack.c.bf16 %v660_v3, %v659_v2 }
  0x9a   : > { %1151 = vmatpush3.bf16.msra.mxu0 %v1150_v7  ;;  %v399_v7 = vsub.s32 0, %v398_v6 }
  0x9b   : > { %1183 = vmatpush3.bf16.msra.mxu1 %v1182_v8  ;;  %1153 = vmatprep.subr.bf16.mxu0 %v1152_v11  ;;  %v395_v8 = vld [vmem:[%s1806_s2] sm:$0xf] }
  0x9c   : > { %1185 = vmatprep.subr.bf16.mxu1 %v1184_v15  ;;  %v400_v11 = vrot.slane %v395_v8, %v399_v7  ;;  %v408_v12 = vrot.slane %v395_v8, %v407_v0  ;;  %v404_v13 = vrot.slane %v395_v8, %v403_v9  ;;  %v412_v14 = vrot.slane %v395_v8, %v411_v10 }
  0x9e   : > { %1155 = vmatpush3.bf16.msra.mxu0 %v1154_v16 }
  0x9f   : > { %1187 = vmatpush3.bf16.msra.mxu1 %v1186_v19  ;;  %1157 = vmatprep.subr.bf16.mxu0 %v1156_v23 }
  0xa0   : > { %1189 = vmatprep.subr.bf16.mxu1 %v1188_v27 }
  0xa2   : > { %1159 = vmatpush3.bf16.msra.mxu0 %v1158_v28 }
  0xa3   : > { %1191 = vmatpush3.bf16.msra.mxu1 %v1190_v31  ;;  %1161 = vmatprep.subr.bf16.mxu0 %v1160_v35 }
  0xa4   : > { %1193 = vmatprep.subr.bf16.mxu1 %v1192_v39 }
  0xa6   : > { %1163 = vmatpush3.bf16.msra.mxu0 %v1162_v40 }
  0xa7   : > { %1195 = vmatpush3.bf16.msra.mxu1 %v1194_v43  ;;  %1165 = vmatprep.subr.bf16.mxu0 %v1164_v47 }
  0xa8   : > { %1197 = vmatprep.subr.bf16.mxu1 %v1196_v51 }
  0xaa   : > { %1167 = vmatpush3.bf16.msra.mxu0 %v1166_v52 }
  0xab   : > { %1199 = vmatpush3.bf16.msra.mxu1 %v1198_v55  ;;  %1169 = vmatprep.subr.bf16.mxu0 %v1168_v59 }
  0xac   : > { %1201 = vmatprep.subr.bf16.mxu1 %v1200_v63 }
  0xae   : > { %1171 = vmatpush3.bf16.msra.mxu0 %v1170_v1 }
  0xaf   : > { %1203 = vmatpush3.bf16.msra.mxu1 %v1202_v4 }
 0x163   : > { %v483_v15 = vpop.f32.mrb[0].mxu0 }
 0x164   : > { %v484_v16 = vadd.f32 %v483_v15, %v400_v11  ;;  %v560_v17 = vpop.f32.mrb[0].mxu1  ;;  %v485_v18 = vpop.f32.mrb[1].mxu0 }
 0x165   : > { %v561_v19 = vadd.f32 %v560_v17, %v408_v12  ;;  %v486_v20 = vadd.f32 %v485_v18, %v404_v13  ;;  %v562_v21 = vpop.f32.mrb[1].mxu1  ;;  %v992_v17 = vld [vmem:[%s1808_s4] ss:$0 sm:$0xff] }
 0x166   : > { %v579_v22 = vmul.f32 0.70710677, %v484_v16  ;;  %v563_v23 = vadd.f32 %v562_v21, %v412_v14  ;;  %v571_v47 = vmul.f32 0.5, %v484_v16 }
 0x167   : > { %v581_v24 = vmul.f32 0.70710677, %v561_v19  ;;  %v580_v25 = vmul.f32 0.70710677, %v486_v20  ;;  %v489_v27 = vpop.f32.mrb[2].mxu0  ;;  %v572_v45 = vmul.f32 0.5, %v486_v20 }
 0x168   : > { %1294 = verf.f32 %v579_v22  ;;  %v582_v26 = vmul.f32 0.70710677, %v563_v23  ;;  %v566_v28 = vpop.f32.mrb[2].mxu1  ;;  %v490_v29 = vadd.f32 %v489_v27, %v400_v11  ;;  %v491_v31 = vpop.f32.mrb[3].mxu0  ;;  %v574_v48 = vmul.f32 0.5, %v563_v23 }
 0x169   : > { %1296 = verf.f32 %v581_v24  ;;  %v567_v30 = vadd.f32 %v566_v28, %v408_v12  ;;  %v568_v32 = vpop.f32.mrb[3].mxu1  ;;  %v492_v33 = vadd.f32 %v491_v31, %v404_v13  ;;  %v573_v51 = vmul.f32 0.5, %v561_v19 }
 0x16a   : > { %1298 = verf.f32 %v580_v25  ;;  %v569_v34 = vadd.f32 %v568_v32, %v412_v14  ;;  %v583_v35 = vmul.f32 0.70710677, %v490_v29  ;;  %v575_v63 = vmul.f32 0.5, %v490_v29 }
 0x16b   : > { %1300 = verf.f32 %v582_v26  ;;  %v585_v36 = vmul.f32 0.70710677, %v567_v30  ;;  %v584_v37 = vmul.f32 0.70710677, %v492_v33  ;;  %v576_v61 = vmul.f32 0.5, %v492_v33 }
 0x16c   : > { %1302 = verf.f32 %v583_v35  ;;  %v586_v38 = vmul.f32 0.70710677, %v569_v34  ;;  %v578_v1 = vmul.f32 0.5, %v569_v34  ;;  %v577_v3 = vmul.f32 0.5, %v567_v30 }
 0x16d   : > { %1304 = verf.f32 %v585_v36 }
 0x16e   : > { %1306 = verf.f32 %v584_v37 }
 0x16f   : > { %1308 = verf.f32 %v586_v38 }
 0x172   : > { %v1295_v39 = vpop.eup %1294 }
 0x173   : > { %v1297_v40 = vpop.eup %1296  ;;  %v595_v42 = vadd.f32 1.0, %v1295_v39 }
 0x174   : > { %v1299_v41 = vpop.eup %1298  ;;  %v597_v44 = vadd.f32 1.0, %v1297_v40 }
 0x175   : > { %v1301_v43 = vpop.eup %1300  ;;  %v596_v46 = vadd.f32 1.0, %v1299_v41  ;;  %v603_v54 = vmul.f32 %v595_v42, %v571_v47 }
 0x176   : > { %v598_v49 = vadd.f32 1.0, %v1301_v43  ;;  %v1303_v50 = vpop.eup %1302  ;;  %v605_v57 = vmul.f32 %v597_v44, %v573_v51 }
 0x177   : > { %v604_v52 = vmul.f32 %v596_v46, %v572_v45  ;;  %v1305_v53 = vpop.eup %1304  ;;  %v599_v58 = vadd.f32 1.0, %v1303_v50 }
 0x178   : > { %v606_v55 = vmul.f32 %v598_v49, %v574_v48  ;;  %v1307_v56 = vpop.eup %1306  ;;  %v601_v60 = vadd.f32 1.0, %v1305_v53 }
 0x179   : > { %741 = vmatprep.mubr.f32.mxu0 %v604_v52  ;;  %v1309_v59 = vpop.eup %1308  ;;  %v600_v62 = vadd.f32 1.0, %v1307_v56  ;;  %v607_v6 = vmul.f32 %v599_v58, %v575_v63 }
 0x17a   : > { %816 = vmatprep.mubr.f32.mxu1 %v606_v55  ;;  %742 = vmatmul.mubr.f32.vlgmr.msra.gmra.mrb[4].mxu0 %v603_v54  ;;  %v602_v2 = vadd.f32 1.0, %v1309_v59  ;;  %v609_v7 = vmul.f32 %v601_v60, %v577_v3 }
 0x17b   : > { %817 = vmatmul.mubr.f32.vlgmr.msra.gmra.mrb[4].mxu1 %v605_v57  ;;  %v608_v4 = vmul.f32 %v600_v62, %v576_v61 }
 0x17c   : > { %v610_v5 = vmul.f32 %v602_v2, %v578_v1 }
 0x17d   : > { %746 = vmatprep.mubr.f32.mxu0 %v608_v4 }
 0x17e   : > { %821 = vmatprep.mubr.f32.mxu1 %v610_v5  ;;  %747 = vmatmul.mubr.f32.gmra.mrb[6].mxu0 %v607_v6 }
 0x17f   : > { %822 = vmatmul.mubr.f32.gmra.mrb[6].mxu1 %v609_v7 }
 0x24d   : > { %v1032_v8 = vpop.f32.mrb[4].mxu0 }
 0x24e   : > { %v1070_v0 = vpop.f32.mrb[4].mxu1  ;;  %v1033_v9 = vpop.f32.mrb[5].mxu0 }
 0x24f   : > { %v1034_v10 = vadd.f32 %v1033_v9, %v1032_v8  ;;  %v1071_v11 = vpop.f32.mrb[5].mxu1 }
 0x250   : > { %v1072_v12 = vadd.f32 %v1071_v11, %v1070_v0 }
 0x251   : > { %v1035_v14 = vpop.f32.mrb[6].mxu0 }
 0x252   : > { %v819_v13 = vadd.f32 %v1072_v12, %v1034_v10  ;;  %v1073_v15 = vpop.f32.mrb[6].mxu1  ;;  %v1036_v16 = vpop.f32.mrb[7].mxu0 }
 0x253   : > { %v1037_v18 = vadd.f32 %v1036_v16, %v1035_v14  ;;  %v1074_v19 = vpop.f32.mrb[7].mxu1 }
 0x254   : > { %v1075_v20 = vadd.f32 %v1074_v19, %v1073_v15  ;;  %v843_v21 = vadd.f32 %v992_v17, %v819_v13 }
 0x256   : > { %v824_v22 = vadd.f32 %v1075_v20, %v1037_v18  ;;  %845 = vst [vmem:[%s313_s11] sm:$0xff] %v843_v21 }
 0x258   : > { %v844_v23 = vadd.f32 %v992_v17, %v824_v22 }
 0x25a   : > { %846 = vst [vmem:[%s313_s11 + $0x8] sm:$0xff] %v844_v23 }
 0x25b   : > { %1409 = shalt.err (!%p1406_p11)
}
 0x25c   : > { %s1410_s26 = scalar_lea.hbm %s1753_s7, 256  ;;  %s1414_s6 = scalar_lea.hbm %s1809_s5, 512 }
 0x25d   : > { %p1411_p0 = scmp.ne.s32.totalorder %s1753_s7, %s1410_s26  ;;  %p1415_p6 = scmp.lt.u32.totalorder %s1753_s7, %s1809_s5 }
 0x25e   : > { %p1416_p7 = scmp.lt.u32.totalorder %s1414_s6, %s1410_s26  ;;  %p1418_p8 = scmp.lt.u32.totalorder %s1410_s26, %s1753_s7 }
 0x25f   : > { %p1412_p4 = pnand %p1411_p0, %p1826_p12 }
 0x260   : > { %p1417_p2 = por %p1416_p7, %p1415_p6 }
 0x261   : > { %p1413_p13 = pneg %p1412_p4 }
 0x262   : > { %p1419_p1 = por %p1418_p8, %p1417_p2 }
 0x264   : > { %p1420_p10 = pnand %p1419_p1, %p1413_p13 }
 0x266   : > { %1423 = shalt.err (!%p1420_p10)
}
 0x267   : > { %s1493_s10 = smov 128   ;;  %s1494_s16 = smov 8  }
 0x268   : > { %1214 = dma.vmem_to_hbm [thread:$0]  (%p1826_p12), %s1755_s13, 256, %s1753_s7, %s848_s14, %s1493_s10, %s1493_s10, %s1494_s16  }
 0x269 PF: > { %s876_s15 = sand.u32 1, %s1462_s18   ;;  %p1827_p3 = scmp.ne.s32.totalorder %s1818_s29, 0 }
 0x26a   : > { %p1828_p5 = scmp.ge.s32.totalorder %s1482_s23, 2  ;;  %s877_s21 = scalar_lea.sflag [#allocation4], %s876_s15 }
 0x26c   : > { %p1228_p9 = pnand %p1828_p5, %p1827_p3 }
 0x26e   : > { %1457 = dma.done.wait (!%p1228_p9), %s877_s21, 256  }
 0x26f   : > { %1459 = vsyncadd (!%p1228_p9), %s877_s21, 4294967040  ;;  %s22_s23 = sadd.s32 1, %s1482_s23   ;;  %s1829_s18 = smov %s1466_s19 }
 0x270   : > { %p19_p11 = scmp.ge.s32.totalorder %s22_s23, 4   ;;  %s1830_s19 = smov %s1470_s20 }
 0x271   : > { %s1831_s20 = smov %s1670_s17  ;;  %s1832_s21 = smov %s1478_s22 }
 0x272   : > { %s1833_s22 = smov %s1835_s12  ;;  %21 = sbr.rel (!%p19_p11) target bundleno = 7 (0x7), region = 106 }
 0x279   :  { %882 = vsyncpa [#allocation3], 1 }
 0x27a   :  { %884 = vsyncpa [#allocation3 + $0x1], 1 }
 0x27b   :  { %885 = vsyncpa [#allocation6], 1 }
 0x27c   :  { %886 = vsyncpa [#allocation4], 1 }
 0x27d   :  { %888 = vsyncpa [#allocation4 + $0x1], 1 }

</bundles_post_ra>
